<compile_context>
chip_gen: v7x
topology: tpu7x:2x2x1
jax: 0.10.0
libtpu: 0.0.40
codegen_flags: <defaults>
</compile_context>

<pallas_src>
import jax
import jax.numpy as jnp
from jax.experimental import pallas as pl
from jax.experimental.pallas import tpu as pltpu

renal_keywords = {word.lower(): 3 for word in [
    'acute kidney injury', 'AKI', 'chronic kidney disease', 'CKD',
    'end-stage renal disease', 'ESRD', 'nephrotic syndrome', 'nephritis',
    'glomerulonephritis', 'interstitial nephritis', 'pyelonephritis',
    'diabetic nephropathy', 'hypertensive nephropathy', 'lupus nephritis',
    'focal segmental glomerulosclerosis', 'FSGS', 'polycystic kidney disease',
    'PKD', 'renal cell carcinoma', 'RCC', 'urolithiasis', 'nephrolithiasis',
    'kidney stones', 'urinary tract infection', 'UTI',
    'medullary cystic kidney disease', 'IgA nephropathy',
    'membranous nephropathy', 'thrombotic microangiopathy', 'amyloidosis',
    'Alport syndrome', 'Fabry disease', 'proteinuria', 'hematuria',
    'albuminuria', 'oliguria', 'anuria', 'azotemia', 'hyperkalemia',
    'hypokalemia', 'hypernatremia', 'hyponatremia', 'metabolic acidosis',
    'respiratory acidosis', 'respiratory alkalosis', 'fluid overload',
    'electrolyte imbalance', 'uremia', 'hypertension',
    'nephrogenic diabetes insipidus', 'hypoalbuminemia', 'hyperphosphatemia',
    'hypophosphatemia', 'hypocalcemia', 'hypercalcemia', 'hypomagnesemia',
    'hypermagnesemia', 'hyperparathyroidism', 'osteodystrophy',
    'anemia of CKD', 'renal insufficiency', 'acute renal failure',
    'chronic renal failure', 'dialysis', 'hemodialysis', 'peritoneal dialysis',
    'continuous renal replacement therapy', 'CRRT', 'extracorporeal dialysis',
    'kidney transplant', 'renal replacement therapy', 'RRT',
    'transplant rejection', 'immunosuppressive therapy', 'plasma exchange',
    'glomerular hyperfiltration', 'refractory nephrotic syndrome',
    'steroid-resistant nephrotic syndrome', 'nephrotoxicity',
    'drug-induced nephrotoxicity', 'contrast-induced nephropathy', 'CIN',
    'NSAID-induced nephropathy', 'aminoglycoside nephrotoxicity',
    'vancomycin nephrotoxicity', 'ACE inhibitor nephrotoxicity',
    'cisplatin nephrotoxicity', 'radiocontrast nephropathy',
    'acute tubular necrosis', 'ATN', 'ischemic nephropathy',
    'cyclosporine nephrotoxicity', 'tacrolimus nephrotoxicity',
    'renal failure', 'kidney dysfunction', 'glomerular filtration rate',
    'GFR', 'creatinine clearance', 'eGFR', 'blood urea nitrogen', 'BUN',
    'hydronephrosis', 'renal osteodystrophy', 'nephritic syndrome',
    'nephrocalcinosis', 'renal fibrosis', 'glomerular hypertrophy',
    'tubulointerstitial nephritis']}

NEG_INF = -1e30  # finite stand-in for float('-inf'); identical softmax result


def attention_layer_kernel(hs_ref, bm_ref, w_attn_ref, w_comb_ref, b_comb_ref,
                           out_ref):
    hs = hs_ref[...]                                   # (TB, S, H) f32 tile

    # attention Linear(H,1) without bias (bias folded into bm's additive term
    # on the host): scores[b,s] = sum_h hs[b,s,h] * w[h]
    w_a = w_attn_ref[...]                              # (1, H)
    scores = jnp.sum(hs * w_a[None, :, :], axis=-1)    # (TB, S)

    # fused keyword boost (multiplier) and bias (= b_attn*boost + mask bias)
    boost = bm_ref[0]                                  # (TB, S)
    bias = bm_ref[1]                                   # (TB, S)
    scores = scores * boost + bias

    # softmax over the sequence axis (dim=1)
    m = jnp.max(scores, axis=1, keepdims=True)
    e = jnp.exp(scores - m)
    l = jnp.sum(e, axis=1, keepdims=True)
    r = pl.reciprocal(l, approx=True)                  # EUP slot (free-ish)
    r = r * (2.0 - l * r)                              # one Newton step -> f32 accuracy
    weights = e * r                                    # (TB, S)

    # weighted sum over sequence on the MXU: (TB,1,S) @ (TB,S,H) -> (TB,1,H)
    ctx = jnp.einsum('bqs,bsh->bqh', weights[:, None, :], hs,
                     preferred_element_type=jnp.float32)[:, 0, :]   # (TB, H)

    # BatchNorm1d (eval) affine + fc + residual + bias, all folded on the host
    # into one matmul:  relu(fc(bn(ctx)) + bn(ctx)) == relu(ctx @ W_comb + b_comb)
    out = jnp.dot(ctx, w_comb_ref[...],
                  preferred_element_type=jnp.float32) + b_comb_ref[...]
    out_ref[...] = jnp.maximum(out, 0.0)               # ReLU; Dropout(eval)=id


def _pick_batch_tile(B, S, H, budget_bytes=12 << 20):
    """Largest multiple of 8 that divides B and keeps the double-buffered
    streamed tiles (hs + boost/bias + out) under `budget_bytes` of VMEM."""
    if B % 8 != 0:
        return B                          # full batch; output block dim == B
    per_row = (S * H + 2 * S + H) * 4     # f32 bytes per batch row per step
    cap = max(8, budget_bytes // (2 * per_row))   # x2: double buffering
    tb = 8
    for cand in range(8, min(B, 512) + 1, 8):
        if B % cand == 0 and cand <= cap:
            tb = cand
    return tb


def attention_layer(hidden_states, boost, mask, params):
    B, S, H = hidden_states.shape
    TB = _pick_batch_tile(B, S, H)
    assert B % TB == 0

    # --- host-side constant folding (semantics-preserving algebra) ---------
    # masked((hs.w + b)*boost)  ==  (hs.w)*boost + (b*boost + mask_bias)
    mask_bias = jnp.where(mask == 0, jnp.float32(NEG_INF), jnp.float32(0.0))
    bias = params["b_attn"][0, 0] * boost + mask_bias
    bm = jnp.stack([boost, bias], axis=0).astype(jnp.float32)     # (2, B, S)

    # relu(fc(bn(ctx)) + bn(ctx)) == relu(ctx @ W_comb + b_comb)
    bn_scale = params["bn_scale"].reshape(1, H)
    bn_shift = params["bn_shift"].reshape(1, H)
    w_fc_t = params["w_fc_t"]                                      # (H_in, H_out)
    w_comb = bn_scale.reshape(H, 1) * (w_fc_t + jnp.eye(H, dtype=jnp.float32))
    b_comb = bn_shift @ w_fc_t + params["b_fc"] + bn_shift         # (1, H)

    grid = (B // TB,)
    return pl.pallas_call(
        attention_layer_kernel,
        out_shape=jax.ShapeDtypeStruct((B, H), jnp.float32),
        grid_spec=pltpu.PrefetchScalarGridSpec(
            num_scalar_prefetch=0,
            grid=grid,
            in_specs=[
                # streamed per batch tile (double-buffered by Pallas)
                pl.BlockSpec((TB, S, H), lambda b: (b, 0, 0)),
                pl.BlockSpec((2, TB, S), lambda b: (0, b, 0)),
                # parameters: constant block index -> VMEM-resident across steps
                pl.BlockSpec((1, H), lambda b: (0, 0)),    # w_attn
                pl.BlockSpec((H, H), lambda b: (0, 0)),    # w_comb
                pl.BlockSpec((1, H), lambda b: (0, 0)),    # b_comb
            ],
            out_specs=pl.BlockSpec((TB, H), lambda b: (b, 0)),
        ),
        compiler_params=pltpu.CompilerParams(
            # batch tiles are independent -> shard across v7x's 2 TensorCores
            dimension_semantics=("parallel",),
            # above v5e/v6e scoped defaults (16/32 MiB), below v7x 64 MiB VMEM
            vmem_limit_bytes=48 * 1024 * 1024,
        ),
    )(hidden_states, bm, params["w_attn"], w_comb, b_comb)


def reference(hidden_states, boost, mask, params):
    scores = jnp.einsum("bsh,h->bs", hidden_states, params["w_attn"][0]) \
             + params["b_attn"][0, 0]
    scores = scores * boost
    scores = jnp.where(mask == 0, NEG_INF, scores)
    weights = jax.nn.softmax(scores, axis=1)
    ctx = jnp.sum(hidden_states * weights[:, :, None], axis=1)
    ctx = ctx * params["bn_scale"] + params["bn_shift"]
    fc = ctx @ params["w_fc_t"] + params["b_fc"]
    return jnp.maximum(fc + ctx, 0.0)


if __name__ == "__main__":
    B, S, H = 16, 8, 32        # small shapes consistent with the module
    key = jax.random.PRNGKey(0)
    k_hs, k_wa, k_ba, k_wf, k_bf = jax.random.split(key, 5)

    hidden_states = jax.random.normal(k_hs, (B, S, H), dtype=jnp.float32)

    # deterministic parameter init (shapes per nn.Linear / nn.BatchNorm1d)
    w_attn = jax.random.normal(k_wa, (1, H), dtype=jnp.float32) * 0.1   # Linear(H,1).weight
    b_attn = jax.random.normal(k_ba, (1, 1), dtype=jnp.float32) * 0.1   # Linear(H,1).bias
    w_fc = jax.random.normal(k_wf, (H, H), dtype=jnp.float32) * 0.1     # Linear(H,H).weight (out,in)
    b_fc = jax.random.normal(k_bf, (1, H), dtype=jnp.float32) * 0.1     # Linear(H,H).bias

    # BatchNorm1d eval-mode (PyTorch defaults) folded to scale/shift
    eps = 1e-5
    gamma = jnp.ones((1, H), jnp.float32)
    beta = jnp.zeros((1, H), jnp.float32)
    running_mean = jnp.zeros((1, H), jnp.float32)
    running_var = jnp.ones((1, H), jnp.float32)
    bn_scale = gamma / jnp.sqrt(running_var + eps)
    bn_shift = beta - running_mean * bn_scale

    params = {
        "w_attn": w_attn, "b_attn": b_attn,
        "bn_scale": bn_scale, "bn_shift": bn_shift,
        "w_fc_t": w_fc.T, "b_fc": b_fc,
    }

    # synthetic input_tokens; string->boost lookup is host-side glue
    # (no Pallas equivalent for string hashing), kernel consumes the float boost.
    # TODO(synk): keyword string matching stays on the host; only the numeric boost enters the kernel.
    vocab = ["patient", "with", "aki", "stable", "hypertension", "exam", "uti",
             "dialysis", "routine", "noted", "today", "plan", "ckd", "renal",
             "proteinuria", "followup"]
    input_tokens = [[vocab[(3 * i + j) % len(vocab)] for j in range(S)]
                    for i in range(B)]
    boost = jnp.array(
        [[float(renal_keywords.get(tok.lower(), 1)) for tok in row]
         for row in input_tokens], dtype=jnp.float32)

    # attention mask with a little padding per row (never an all-zero row)
    mask = jnp.array([[1.0 if j < S - (i % 3) else 0.0 for j in range(S)]
                      for i in range(B)], dtype=jnp.float32)

    out = attention_layer(hidden_states, boost, mask, params)
    out = jax.block_until_ready(out)

    ref = reference(hidden_states, boost, mask, params)
    assert out.shape == (B, H)
    assert jnp.allclose(out, ref, atol=1e-4, rtol=1e-4), "mismatch vs JAX reference"

    print("KERNEL_OK")
</pallas_src>

<mosaic_0001>
module attributes {stable_mosaic.version = 11 : i64} {
  func.func @attention_layer_kernel(%arg0: i32, %arg1: memref<16x8x32xf32, #tpu.memory_space<vmem>>, %arg2: memref<2x16x8xf32, #tpu.memory_space<vmem>>, %arg3: memref<1x32xf32, #tpu.memory_space<vmem>>, %arg4: memref<32x32xf32, #tpu.memory_space<vmem>>, %arg5: memref<1x32xf32, #tpu.memory_space<vmem>>, %arg6: memref<16x32xf32, #tpu.memory_space<vmem>>) attributes {dimension_semantics = [#tpu.dimension_semantics<parallel>], iteration_bounds = array<i64: 1>, scalar_prefetch = 0 : i64, scratch_operands = 0 : i64, tpu.core_type = #tpu.core_type<tc>, window_params = [{transform_indices = @transform_0, window_bounds = array<i64: 16, 8, 32>}, {transform_indices = @transform_1, window_bounds = array<i64: 2, 16, 8>}, {pipeline_mode = #tpu.pipeline_mode<synchronous>, transform_indices = @transform_2, window_bounds = array<i64: 1, 32>}, {pipeline_mode = #tpu.pipeline_mode<synchronous>, transform_indices = @transform_3, window_bounds = array<i64: 32, 32>}, {pipeline_mode = #tpu.pipeline_mode<synchronous>, transform_indices = @transform_4, window_bounds = array<i64: 1, 32>}, {transform_indices = @transform_5, window_bounds = array<i64: 16, 32>}]} {
    %c0 = arith.constant 0 : index
    %c0_0 = arith.constant 0 : index
    %c0_1 = arith.constant 0 : index
    %0 = vector.load %arg1[%c0, %c0_0, %c0_1] : memref<16x8x32xf32, #tpu.memory_space<vmem>>, vector<16x8x32xf32>
    %c0_2 = arith.constant 0 : index
    %c0_3 = arith.constant 0 : index
    %1 = vector.load %arg3[%c0_2, %c0_3] : memref<1x32xf32, #tpu.memory_space<vmem>>, vector<1x32xf32>
    %2 = vector.shape_cast %1 : vector<1x32xf32> to vector<1x1x32xf32>
    %3 = vector.broadcast %2 : vector<1x1x32xf32> to vector<16x8x32xf32>
    %4 = arith.mulf %0, %3 : vector<16x8x32xf32>
    %cst = arith.constant dense<0.000000e+00> : vector<16x8xf32>
    %5 = vector.multi_reduction <add>, %4, %cst [2] : vector<16x8x32xf32> to vector<16x8xf32>
    %c0_4 = arith.constant 0 : index
    %c0_5 = arith.constant 0 : index
    %c0_6 = arith.constant 0 : index
    %6 = vector.load %arg2[%c0_4, %c0_5, %c0_6] : memref<2x16x8xf32, #tpu.memory_space<vmem>>, vector<1x16x8xf32>
    %7 = vector.shape_cast %6 : vector<1x16x8xf32> to vector<16x8xf32>
    %c1 = arith.constant 1 : index
    %c0_7 = arith.constant 0 : index
    %c0_8 = arith.constant 0 : index
    %8 = vector.load %arg2[%c1, %c0_7, %c0_8] : memref<2x16x8xf32, #tpu.memory_space<vmem>>, vector<1x16x8xf32>
    %9 = vector.shape_cast %8 : vector<1x16x8xf32> to vector<16x8xf32>
    %10 = arith.mulf %5, %7 : vector<16x8xf32>
    %11 = arith.addf %10, %9 : vector<16x8xf32>
    %cst_9 = arith.constant dense<0xFF800000> : vector<16xf32>
    %12 = vector.multi_reduction <maximumf>, %11, %cst_9 [1] : vector<16x8xf32> to vector<16xf32>
    %13 = vector.shape_cast %12 : vector<16xf32> to vector<16x1xf32>
    %14 = vector.broadcast %13 : vector<16x1xf32> to vector<16x8xf32>
    %15 = arith.subf %11, %14 : vector<16x8xf32>
    %16 = math.exp %15 : vector<16x8xf32>
    %cst_10 = arith.constant dense<0.000000e+00> : vector<16xf32>
    %17 = vector.multi_reduction <add>, %16, %cst_10 [1] : vector<16x8xf32> to vector<16xf32>
    %18 = vector.shape_cast %17 : vector<16xf32> to vector<16x1xf32>
    %19 = tpu.reciprocal %18 {approx = true} : vector<16x1xf32> -> vector<16x1xf32>
    %20 = arith.mulf %18, %19 : vector<16x1xf32>
    %cst_11 = arith.constant 2.000000e+00 : f32
    %21 = vector.broadcast %cst_11 : f32 to vector<16x1xf32>
    %22 = arith.subf %21, %20 : vector<16x1xf32>
    %23 = arith.mulf %19, %22 : vector<16x1xf32>
    %24 = vector.broadcast %23 : vector<16x1xf32> to vector<16x8xf32>
    %25 = arith.mulf %16, %24 : vector<16x8xf32>
    %26 = vector.shape_cast %25 : vector<16x8xf32> to vector<16x1x8xf32>
    "tpu.trace_start"() <{level = 10 : i32, message = "bqs,bsh->bqh"}> : () -> ()
    %cst_12 = arith.constant dense<0.000000e+00> : vector<16x1x32xf32>
    %27 = tpu.matmul %26, %0, %cst_12 {dimension_numbers = #tpu.dot_dimension_numbers<[2], [1], [1], [2], [0, 0, 0, 1, 1, 2], [0], [0]>} : vector<16x1x8xf32>, vector<16x8x32xf32>, vector<16x1x32xf32> -> vector<16x1x32xf32>
    "tpu.trace_stop"() : () -> ()
    %28 = vector.shape_cast %27 : vector<16x1x32xf32> to vector<16x32xf32>
    %c0_13 = arith.constant 0 : index
    %c0_14 = arith.constant 0 : index
    %29 = vector.load %arg4[%c0_13, %c0_14] : memref<32x32xf32, #tpu.memory_space<vmem>>, vector<32x32xf32>
    %cst_15 = arith.constant dense<0.000000e+00> : vector<16x32xf32>
    %30 = tpu.matmul %28, %29, %cst_15 {dimension_numbers = #tpu.dot_dimension_numbers<[1], [0], [0], [1], [0, 0, 1, 1], [], []>} : vector<16x32xf32>, vector<32x32xf32>, vector<16x32xf32> -> vector<16x32xf32>
    %c0_16 = arith.constant 0 : index
    %c0_17 = arith.constant 0 : index
    %31 = vector.load %arg5[%c0_16, %c0_17] : memref<1x32xf32, #tpu.memory_space<vmem>>, vector<1x32xf32>
    %32 = vector.broadcast %31 : vector<1x32xf32> to vector<16x32xf32>
    %33 = arith.addf %30, %32 : vector<16x32xf32>
    %cst_18 = arith.constant 0.000000e+00 : f32
    %34 = vector.broadcast %cst_18 : f32 to vector<16x32xf32>
    %35 = arith.maximumf %33, %34 : vector<16x32xf32>
    %c0_19 = arith.constant 0 : index
    %c0_20 = arith.constant 0 : index
    %36 = vector.load %arg6[%c0_19, %c0_20] : memref<16x32xf32, #tpu.memory_space<vmem>>, vector<16x32xf32>
    tpu.vector_store %arg6[%c0_19, %c0_20], %35 {strides = array<i32>} : memref<16x32xf32, #tpu.memory_space<vmem>>, vector<16x32xf32>,
    return
  }
  func.func @transform_0(%arg0: i32) -> (i32, i32, i32) {
    %c0_i32 = arith.constant 0 : i32
    %c0_i32_0 = arith.constant 0 : i32
    %c0_i32_1 = arith.constant 0 : i32
    return %arg0, %c0_i32, %c0_i32_0 : i32, i32, i32
  }
  func.func @transform_1(%arg0: i32) -> (i32, i32, i32) {
    %c0_i32 = arith.constant 0 : i32
    %c0_i32_0 = arith.constant 0 : i32
    %c0_i32_1 = arith.constant 0 : i32
    return %c0_i32, %arg0, %c0_i32_0 : i32, i32, i32
  }
  func.func @transform_2(%arg0: i32) -> (i32, i32) {
    %c0_i32 = arith.constant 0 : i32
    %c0_i32_0 = arith.constant 0 : i32
    %c0_i32_1 = arith.constant 0 : i32
    return %c0_i32, %c0_i32_0 : i32, i32
  }
  func.func @transform_3(%arg0: i32) -> (i32, i32) {
    %c0_i32 = arith.constant 0 : i32
    %c0_i32_0 = arith.constant 0 : i32
    %c0_i32_1 = arith.constant 0 : i32
    return %c0_i32, %c0_i32_0 : i32, i32
  }
  func.func @transform_4(%arg0: i32) -> (i32, i32) {
    %c0_i32 = arith.constant 0 : i32
    %c0_i32_0 = arith.constant 0 : i32
    %c0_i32_1 = arith.constant 0 : i32
    return %c0_i32, %c0_i32_0 : i32, i32
  }
  func.func @transform_5(%arg0: i32) -> (i32, i32) {
    %c0_i32 = arith.constant 0 : i32
    %c0_i32_0 = arith.constant 0 : i32
    return %arg0, %c0_i32 : i32, i32
  }
}

</mosaic_0001>

<bundles_post_ra>
// kernel: tpu_custom_call.1
= control target key start
LH: loop header
LB: loop body
LE: loop exit
PB: predicated region body
PF: predicated region fallthrough
CT: control target
= control target key end

     0   :  { %10 = vsyncpa [#allocation3], 0  ;;  %s3225_s0 = inlined_call_operand.hbm [shape: f32[16,8,32], index: 0, kind: input, shape index: {}]   ;;  %s3226_s1 = inlined_call_operand.vmem [shape: f32[2,16,8], index: 1, kind: input, shape index: {}]   ;;  %s3227_s2 = inlined_call_operand.vmem [shape: f32[1,32], index: 2, kind: input, shape index: {}]   ;;  %s3228_s3 = inlined_call_operand.vmem [shape: f32[32,32], index: 3, kind: input, shape index: {}]   ;;  %s3229_s4 = inlined_call_operand.vmem [shape: f32[1,32], index: 4, kind: input, shape index: {}]   ;;  %s3230_s5 = inlined_call_operand.hbm [shape: f32[16,32], index: 5, kind: output, shape index: {}]  }
   0x1   :  { %11 = vsyncpa [#allocation4], 0  ;;  %s2659_s18 = smov [#allocation2]   ;;  %s2611_s22 = scalar_lea.hbm %s3225_s0, 2048 }
   0x2   :  { %s17_s19 = sshll.u32 %s2659_s18, 4  ;;  %p2612_p0 = scmp.ne.s32.totalorder %s3225_s0, %s2611_s22  ;;  %s18_s19 = int_to_ptr.vmem [resolvable:$true] %s17_s19 }
   0x3   :  { %p2615_p1 = scmp.lt.u32.totalorder %s2611_s22, %s3225_s0 }
   0x5   :  { %p2617_p2 = pnand %p2615_p1, %p2612_p0 }
   0x7   :  { %2620 = shalt.err (!%p2617_p2)
}
   0x8   :  { %s2621_s27 = scalar_lea.vmem %s18_s19, 2048  ;;  %p2626_p4 = scmp.lt.s32.totalorder %s18_s19, %s18_s19 }
   0x9   :  { %p2622_p3 = scmp.ne.s32.totalorder %s18_s19, %s2621_s27  ;;  %p2627_p5 = scmp.lt.s32.totalorder %s2621_s27, %s2621_s27 }
   0xb   :  { %p2628_p6 = por %p2627_p5, %p2626_p4 }
   0xd   :  { %p2629_p7 = pnand %p2628_p6, %p2622_p3 }
   0xf   :  { %2632 = shalt.err (!%p2629_p7)
}
  0x10   :  { %s2660_s28 = smov 128   ;;  %s2661_s29 = smov 8  }
  0x11   :  { %23 = dma.hbm_to_vmem [thread:$0]  %s3225_s0, 2048, %s18_s19, [#allocation3], %s2660_s28, %s2660_s28, %s2661_s29  }
  0x12   :  { %2655 = dma.done.wait [#allocation3], 2048  }
  0x13   :  { %2656 = vsyncadd [#allocation3], 4294965248  ;;  %v130_v0 = vlaneseq  ;;  %v2716_v4 = vld [vmem:[#allocation2 + $0x10] sm:$0xff]  ;;  %v2721_v5 = vld [vmem:[%s3227_s2] ss:$0 sm:$0xff]  ;;  %vm74_vm0 = vcmask 261120  }
  0x14   :  { %v2723_v6 = vld [vmem:[#allocation2] sm:$0xff]  ;;  %v60_v7 = vmul.f32 %v2721_v5, %v2716_v4  ;;  %v38_v9 = vld [vmem:[#allocation2 + $0x18] sm:$0xff]  ;;  %v36_v10 = vld [vmem:[#allocation2 + $0x8] sm:$0xff]  ;;  %v2662_v59 = vmov 0   ;;  %vm550_vm1 = vcmask 1041409   ;;  %vm552_vm2 = vcmask 1042434  }
  0x15   :  { %v2711_v1 = vshrl.u32 %v130_v0, 7  ;;  %v485_v2 = vand.u32 127, %v130_v0  ;;  %v58_v8 = vmul.f32 %v2721_v5, %v2723_v6  ;;  %v61_v11 = vmul.f32 %v2721_v5, %v38_v9  ;;  %v40_v13 = vld [vmem:[#allocation2 + $0x28] sm:$0xff]  ;;  %v39_v14 = vld [vmem:[#allocation2 + $0x20] sm:$0xff]  ;;  %v42_v21 = vld [vmem:[#allocation2 + $0x38] sm:$0xff]  ;;  %2567 = vset.pattern.permute.xlu0 %v2662_v59  ;;  %2568 = vset.pattern.permute.xlu1 %v2662_v59  ;;  %s2665_s23 = smov [#allocation5]  }
  0x16   :  { %v59_v12 = vmul.f32 %v2721_v5, %v36_v10  ;;  %v81_v15 = vsel %vm74_vm0, %v60_v7, 0.0  ;;  %v63_v19 = vmul.f32 %v2721_v5, %v40_v13  ;;  %v62_v20 = vmul.f32 %v2721_v5, %v39_v14  ;;  %v41_v22 = vld [vmem:[#allocation2 + $0x30] sm:$0xff]  ;;  %v123_v30 = vld [vmem:[%s3226_s1] sm:$0xff]  ;;  %v2782_v50 = vld [vmem:[#allocation2 + $0x48] sm:$0xff]  ;;  %s2389_s24 = sshll.u32 %s2665_s23, 4  ;;  %s2390_s24 = int_to_ptr.vmem [resolvable:$true] %s2389_s24 }
  0x17   :  { %v2714_v3 = vsub.s32 %v485_v2, %v2711_v1  ;;  %v75_v16 = vsel %vm74_vm0, %v58_v8, 0.0  ;;  %82 = vadd.xlane.f32.xlu1 %v81_v15  ;;  %v84_v17 = vsel %vm74_vm0, %v61_v11, 0.0  ;;  %v65_v25 = vmul.f32 %v2721_v5, %v42_v21  ;;  %v2402_v37 = vld [vmem:[%s3226_s1 + $0x10] sm:$0xff]  ;;  %v2777_v47 = vld [vmem:[#allocation2 + $0x40] sm:$0xff]  ;;  %v2802_v63 = vld [vmem:[#allocation2 + $0x58] sm:$0xff]  ;;  %s2633_s25 = scalar_lea.vmem %s2390_s24, 256  ;;  %p2638_p9 = scmp.lt.s32.totalorder %s2390_s24, %s2390_s24 }
  0x18   :  { %76 = vadd.xlane.f32.xlu0 %v75_v16  ;;  %v78_v18 = vsel %vm74_vm0, %v59_v12, 0.0  ;;  %v90_v23 = vsel %vm74_vm0, %v63_v19, 0.0  ;;  %v87_v24 = vsel %vm74_vm0, %v62_v20, 0.0  ;;  %v64_v26 = vmul.f32 %v2721_v5, %v41_v22  ;;  %v2797_v60 = vld [vmem:[#allocation2 + $0x50] sm:$0xff]  ;;  %v2816_v12 = vld [vmem:[#allocation2 + $0x68] sm:$0xff]  ;;  %v2820_v14 = vld [vmem:[#allocation2 + $0x78] sm:$0xff]  ;;  %p2634_p8 = scmp.ne.s32.totalorder %s2390_s24, %s2633_s25  ;;  %p2639_p10 = scmp.lt.s32.totalorder %s2633_s25, %s2633_s25 }
  0x19   :  { %v96_v27 = vsel %vm74_vm0, %v65_v25, 0.0  ;;  %v2744_v29 = vsub.s32 1, %v2711_v1  ;;  %v2751_v32 = vsub.s32 2, %v2711_v1  ;;  %v2754_v33 = vsub.s32 0, %v2711_v1  ;;  %v2832_v21 = vld [vmem:[#allocation2 + $0x70] sm:$0xff] }
  0x1a   :  { %v93_v28 = vsel %vm74_vm0, %v64_v26, 0.0  ;;  %v2758_v35 = vsub.s32 3, %v2711_v1  ;;  %v2767_v40 = vsub.s32 4, %v2711_v1  ;;  %v2772_v43 = vsub.s32 5, %v2711_v1  ;;  %v124_v26 = vld [vmem:[%s3226_s1 + $0x8] sm:$0xff]  ;;  %p2640_p11 = por %p2639_p10, %p2638_p9 }
  0x1b   :  { %85 = vadd.xlane.f32.xlu1 %v84_v17  ;;  %v140_v31 = vrot.slane %v123_v30, %v2744_v29  ;;  %v147_v34 = vrot.slane %v123_v30, %v2751_v32  ;;  %v133_v36 = vrot.slane %v123_v30, %v2754_v33  ;;  %v279_v39 = vrot.slane %v2402_v37, %v2754_v33 }
  0x1c   :  { %79 = vadd.xlane.f32.xlu0 %v78_v18  ;;  %v154_v38 = vrot.slane %v123_v30, %v2758_v35  ;;  %v286_v41 = vrot.slane %v2402_v37, %v2744_v29  ;;  %v161_v42 = vrot.slane %v123_v30, %v2767_v40  ;;  %v293_v44 = vrot.slane %v2402_v37, %v2751_v32  ;;  %p2641_p12 = pnand %p2640_p11, %p2634_p8 }
  0x1d   :  { %v168_v45 = vrot.slane %v123_v30, %v2772_v43  ;;  %v300_v46 = vrot.slane %v2402_v37, %v2758_v35  ;;  %v66_v48 = vmul.f32 %v2721_v5, %v2777_v47  ;;  %v67_v51 = vmul.f32 %v2721_v5, %v2782_v50 }
  0x1e   :  { %v2788_v53 = vsub.s32 6, %v2711_v1  ;;  %v307_v55 = vrot.slane %v2402_v37, %v2767_v40  ;;  %v2793_v56 = vsub.s32 7, %v2711_v1  ;;  %v314_v58 = vrot.slane %v2402_v37, %v2772_v43  ;;  %v2806_v1 = vld [vmem:[#allocation2 + $0x60] sm:$0xff] }
  0x1f   :  { %91 = vadd.xlane.f32.xlu1 %v90_v23  ;;  %v99_v49 = vsel %vm74_vm0, %v66_v48, 0.0  ;;  %v102_v52 = vsel %vm74_vm0, %v67_v51, 0.0  ;;  %v68_v61 = vmul.f32 %v2721_v5, %v2797_v60  ;;  %v69_v0 = vmul.f32 %v2721_v5, %v2802_v63 }
  0x20   :  { %88 = vadd.xlane.f32.xlu0 %v87_v24  ;;  %v175_v54 = vrot.slane %v123_v30, %v2788_v53  ;;  %v182_v57 = vrot.slane %v123_v30, %v2793_v56  ;;  %v70_v7 = vmul.f32 %v2721_v5, %v2806_v1  ;;  %v321_v9 = vrot.slane %v2402_v37, %v2788_v53 }
  0x21   :  { %v105_v62 = vsel %vm74_vm0, %v68_v61, 0.0  ;;  %v108_v2 = vsel %vm74_vm0, %v69_v0, 0.0  ;;  %v328_v10 = vrot.slane %v2402_v37, %v2793_v56  ;;  %v71_v13 = vmul.f32 %v2721_v5, %v2816_v12  ;;  %v2403_v37 = vld [vmem:[%s3226_s1 + $0x18] sm:$0xff] }
  0x22   :  { %v111_v8 = vsel %vm74_vm0, %v70_v7, 0.0  ;;  %v73_v17 = vmul.f32 %v2721_v5, %v2820_v14  ;;  %v72_v23 = vmul.f32 %v2721_v5, %v2832_v21  ;;  %v349_v48 = vrot.slane %v2403_v37, %v2751_v32 }
  0x23   :  { %97 = vadd.xlane.f32.xlu1 %v96_v27  ;;  %v114_v16 = vsel %vm74_vm0, %v71_v13, 0.0  ;;  %v238_v59 = vrot.slane %v124_v26, %v2793_v56  ;;  %v370_v0 = vrot.slane %v2403_v37, %v2772_v43  ;;  %vm554_vm3 = vcmask 1043459  }
  0x24   :  { %94 = vadd.xlane.f32.xlu0 %v93_v28  ;;  %v120_v19 = vsel %vm74_vm0, %v73_v17, 0.0  ;;  %v117_v24 = vsel %vm74_vm0, %v72_v23, 0.0  ;;  %v189_v28 = vrot.slane %v124_v26, %v2754_v33  ;;  %vm556_vm4 = vcmask 1044484  }
  0x25   :  { %vm558_vm5 = vcmask 1045509   ;;  %vm560_vm6 = vcmask 1046534   ;;  %vm562_vm7 = vcmask 1047559   ;;  %vm573_vm8 = vcmask 64512  }
  0x26   :  { %vm2664_vm9 = vmmov 0  }
  0x34   :  { %142 = vbcast.lane.b32.xlu1 %v140_v31, 256  ;;  %v203_v31 = vrot.slane %v124_v26, %v2751_v32 }
  0x38   :  { %149 = vbcast.lane.b32.xlu1 %v147_v34, 256 }
  0x3a   :  { %135 = vbcast.lane.b32.xlu0 %v133_v36, 256  ;;  %v210_v36 = vrot.slane %v124_v26, %v2758_v35 }
  0x3c   :  { %156 = vbcast.lane.b32.xlu1 %v154_v38, 256 }
  0x3e   :  { %281 = vbcast.lane.b32.xlu0 %v279_v39, 256  ;;  %v196_v39 = vrot.slane %v124_v26, %v2744_v29 }
  0x40   :  { %288 = vbcast.lane.b32.xlu1 %v286_v41, 256  ;;  %v335_v41 = vrot.slane %v2403_v37, %v2754_v33 }
  0x42   :  { %163 = vbcast.lane.b32.xlu0 %v161_v42, 256 }
  0x44   :  { %295 = vbcast.lane.b32.xlu1 %v293_v44, 256  ;;  %v342_v44 = vrot.slane %v2403_v37, %v2744_v29 }
  0x46   :  { %170 = vbcast.lane.b32.xlu0 %v168_v45, 256  ;;  %v217_v45 = vrot.slane %v124_v26, %v2767_v40 }
  0x48   :  { %302 = vbcast.lane.b32.xlu1 %v300_v46, 256 }
  0x65   :  { %100 = vadd.xlane.f32.xlu0 %v99_v49  ;;  %v224_v49 = vrot.slane %v124_v26, %v2772_v43 }
  0x6c   :  { %103 = vadd.xlane.f32.xlu1 %v102_v52 }
  0x7b   :  { %177 = vbcast.lane.b32.xlu0 %v175_v54, 256  ;;  %v356_v54 = vrot.slane %v2403_v37, %v2758_v35 }
  0x7d   :  { %309 = vbcast.lane.b32.xlu1 %v307_v55, 256  ;;  %v231_v55 = vrot.slane %v124_v26, %v2788_v53 }
  0x81   :  { %184 = vbcast.lane.b32.xlu1 %v182_v57, 256 }
  0x85   :  { %316 = vbcast.lane.b32.xlu1 %v314_v58, 256  ;;  %v363_v58 = vrot.slane %v2403_v37, %v2767_v40 }
  0x9a   :  { %106 = vadd.xlane.f32.xlu0 %v105_v62 }
  0xa4   :  { %v2814_v11 = vpop.xlane.xlu1 %82 }
  0xa5   :  { %v77_v27 = vpop.xlane.xlu0 %76 }
  0xa8   :  { %v2822_v15 = vpop.xlane.xlu1 %85 }
  0xa9   :  { %109 = vadd.xlane.f32.xlu1 %v108_v2  ;;  %v80_v34 = vpop.xlane.xlu0 %79  ;;  %v377_v2 = vrot.slane %v2403_v37, %v2788_v53 }
  0xac   :  { %v2827_v18 = vpop.xlane.xlu1 %91 }
  0xad   :  { %112 = vadd.xlane.f32.xlu1 %v111_v8  ;;  %v89_v38 = vpop.xlane.xlu0 %88  ;;  %v384_v8 = vrot.slane %v2403_v37, %v2793_v56 }
  0xb0   :  { %323 = vbcast.lane.b32.xlu0 %v321_v9, 256  ;;  %v2830_v20 = vpop.xlane.xlu1 %97 }
  0xb1   :  { %v95_v46 = vpop.xlane.xlu0 %94 }
  0xb4   :  { %v143_v22 = vpop.permute.xlu1 %142 }
  0xb5   :  { %v136_v52 = vpop.permute.xlu0 %135 }
  0xb6   :  { %v258_v9 = vmul.f32 %v136_v52, %v77_v27 }
  0xb8   :  { %v150_v25 = vpop.permute.xlu1 %149 }
  0xb9   :  { %v282_v61 = vpop.permute.xlu0 %281  ;;  %v260_v26 = vmul.f32 %v150_v25, %v2814_v11 }
  0xba   :  { %v2859_v13 = vadd.f32 %v282_v61, %v258_v9 }
  0xbc   :  { %v157_v30 = vpop.permute.xlu1 %156 }
  0xbd   :  { %v164_v7 = vpop.permute.xlu0 %163  ;;  %v261_v17 = vmul.f32 %v157_v30, %v2822_v15 }
  0xbe   :  { %330 = vbcast.lane.b32.xlu1 %v328_v10, 256  ;;  %v262_v15 = vmul.f32 %v164_v7, %v89_v38 }
  0xc0   :  { %v289_v5 = vpop.permute.xlu1 %288 }
  0xc1   :  { %v171_v23 = vpop.permute.xlu0 %170 }
  0xc2   :  { %v263_v27 = vmul.f32 %v171_v23, %v2827_v18 }
  0xc4   :  { %v296_v42 = vpop.permute.xlu1 %295 }
  0xc8   :  { %v303_v51 = vpop.permute.xlu1 %302 }
  0xcf   :  { %115 = vadd.xlane.f32.xlu0 %v114_v16  ;;  %v259_v16 = vmul.f32 %v143_v22, %v80_v34  ;;  %v2871_v22 = vadd.f32 %v296_v42, %v260_v26 }
  0xd3   :  { %121 = vadd.xlane.f32.xlu0 %v120_v19  ;;  %v2863_v19 = vadd.f32 %v289_v5, %v259_v16 }
  0xe2   :  { %118 = vadd.xlane.f32.xlu1 %v117_v24  ;;  %v2865_v24 = vadd.f32 %v303_v51, %v261_v17 }
  0xe9   :  { %191 = vbcast.lane.b32.xlu0 %v189_v28, 256 }
  0xed   :  { %205 = vbcast.lane.b32.xlu0 %v203_v31, 256 }
  0xf1   :  { %212 = vbcast.lane.b32.xlu0 %v210_v36, 256 }
  0xf2   :  { %v101_v11 = vpop.xlane.xlu0 %100 }
  0xf3   :  { %198 = vbcast.lane.b32.xlu1 %v196_v39, 256 }
  0xf5   :  { %337 = vbcast.lane.b32.xlu0 %v335_v41, 256 }
  0xf6   :  { %v178_v25 = vpop.permute.xlu0 %177 }
  0xf7   :  { %344 = vbcast.lane.b32.xlu1 %v342_v44, 256  ;;  %v264_v36 = vmul.f32 %v178_v25, %v95_v46 }
  0xf9   :  { %219 = vbcast.lane.b32.xlu0 %v217_v45, 256  ;;  %v104_v57 = vpop.xlane.xlu1 %103 }
  0xfb   :  { %351 = vbcast.lane.b32.xlu1 %v349_v48, 256 }
  0xfd   :  { %226 = vbcast.lane.b32.xlu0 %v224_v49, 256  ;;  %v310_v62 = vpop.permute.xlu1 %309 }
  0xfe   :  { %v2877_v30 = vadd.f32 %v310_v62, %v262_v15 }
  0xff   :  { %358 = vbcast.lane.b32.xlu1 %v356_v54, 256 }
 0x101   :  { %233 = vbcast.lane.b32.xlu0 %v231_v55, 256  ;;  %v185_v10 = vpop.permute.xlu1 %184 }
 0x102   :  { %v265_v38 = vmul.f32 %v185_v10, %v2830_v20 }
 0x103   :  { %365 = vbcast.lane.b32.xlu1 %v363_v58, 256 }
 0x105   :  { %240 = vbcast.lane.b32.xlu0 %v238_v59, 256  ;;  %v317_v28 = vpop.permute.xlu1 %316 }
 0x106   :  { %v2873_v31 = vadd.f32 %v317_v28, %v263_v27 }
 0x107   :  { %372 = vbcast.lane.b32.xlu1 %v370_v0, 256 }
 0x109   :  { %379 = vbcast.lane.b32.xlu0 %v377_v2, 256 }
 0x10b   :  { %386 = vbcast.lane.b32.xlu1 %v384_v8, 256 }
 0x10d   :  { %437 = vperm.xlu0 %2567, %v2859_v13  }
 0x10f   :  { %440 = vperm.xlu1 %2568, %v2863_v19  }
 0x111   :  { %446 = vperm.xlu0 %2567, %v2865_v24  }
 0x113   :  { %443 = vperm.xlu1 %2568, %v2871_v22  }
 0x115   :  { %452 = vperm.xlu0 %2567, %v2873_v31  }
 0x117   :  { %449 = vperm.xlu1 %2568, %v2877_v30  }
 0x127   :  { %v107_v34 = vpop.xlane.xlu0 %106 }
 0x12b   :  { %v324_v18 = vpop.permute.xlu0 %323 }
 0x12c   :  { %v2880_v5 = vadd.f32 %v324_v18, %v264_v36 }
 0x12e   :  { %455 = vperm.xlu1 %2568, %v2880_v5  }
 0x136   :  { %v110_v37 = vpop.xlane.xlu1 %109 }
 0x13a   :  { %v113_v39 = vpop.xlane.xlu1 %112 }
 0x13e   :  { %v331_v41 = vpop.permute.xlu1 %330 }
 0x13f   :  { %v2884_v42 = vadd.f32 %v331_v41, %v265_v38 }
 0x141   :  { %458 = vperm.xlu0 %2567, %v2884_v42  }
 0x15c   :  { %v116_v44 = vpop.xlane.xlu0 %115 }
 0x160   :  { %v122_v45 = vpop.xlane.xlu0 %121 }
 0x164   :  { %v192_v48 = vpop.permute.xlu0 %191 }
 0x165   :  { %v266_v46 = vmul.f32 %v192_v48, %v101_v11 }
 0x168   :  { %v206_v49 = vpop.permute.xlu0 %205 }
 0x169   :  { %v268_v2 = vmul.f32 %v206_v49, %v107_v34 }
 0x16c   :  { %v213_v51 = vpop.permute.xlu0 %212 }
 0x16d   :  { %v269_v10 = vmul.f32 %v213_v51, %v110_v37 }
 0x16f   :  { %v119_v52 = vpop.xlane.xlu1 %118 }
 0x170   :  { %v338_v54 = vpop.permute.xlu0 %337 }
 0x171   :  { %v2887_v55 = vadd.f32 %v338_v54, %v266_v46 }
 0x173   :  { %461 = vperm.xlu1 %2568, %v2887_v55   ;;  %v199_v58 = vpop.permute.xlu1 %198 }
 0x174   :  { %v220_v59 = vpop.permute.xlu0 %219  ;;  %v267_v20 = vmul.f32 %v199_v58, %v104_v57 }
 0x175   :  { %v270_v26 = vmul.f32 %v220_v59, %v113_v39 }
 0x177   :  { %v345_v61 = vpop.permute.xlu1 %344 }
 0x178   :  { %v227_v62 = vpop.permute.xlu0 %226  ;;  %v2890_v0 = vadd.f32 %v345_v61, %v267_v20 }
 0x179   :  { %v271_v15 = vmul.f32 %v227_v62, %v116_v44 }
 0x17a   :  { %464 = vperm.xlu0 %2567, %v2890_v0  }
 0x17b   :  { %v352_v7 = vpop.permute.xlu1 %351 }
 0x17c   :  { %v234_v8 = vpop.permute.xlu0 %233  ;;  %v2893_v9 = vadd.f32 %v352_v7, %v268_v2 }
 0x17d   :  { %v272_v11 = vmul.f32 %v234_v8, %v119_v52 }
 0x17e   :  { %467 = vperm.xlu1 %2568, %v2893_v9  }
 0x17f   :  { %v359_v16 = vpop.permute.xlu1 %358 }
 0x180   :  { %v241_v17 = vpop.permute.xlu0 %240  ;;  %v2896_v23 = vadd.f32 %v359_v16, %v269_v10 }
 0x181   :  { %v273_v18 = vmul.f32 %v241_v17, %v122_v45 }
 0x182   :  { %470 = vperm.xlu0 %2567, %v2896_v23  }
 0x183   :  { %v366_v57 = vpop.permute.xlu1 %365 }
 0x184   :  { %v2899_v28 = vadd.f32 %v366_v57, %v270_v26  ;;  %v380_v27 = vpop.permute.xlu0 %379 }
 0x185   :  { %v2902_v34 = vadd.f32 %v380_v27, %v272_v11 }
 0x186   :  { %473 = vperm.xlu1 %2568, %v2899_v28  }
 0x187   :  { %v373_v25 = vpop.permute.xlu1 %372 }
 0x188   :  { %v2904_v36 = vadd.f32 %v373_v25, %v271_v15 }
 0x18a   :  { %476 = vperm.xlu0 %2567, %v2904_v36   ;;  %479 = vperm.xlu1 %2568, %v2902_v34  }
 0x18b   :  { %v387_v37 = vpop.permute.xlu1 %386 }
 0x18c   :  { %v2908_v39 = vadd.f32 %v387_v37, %v273_v18  ;;  %v438_v41 = vpop.permute.xlu0 %437 }
 0x18d   :  { %v489_v45 = vrot.slane %v438_v41, %v2714_v3 }
 0x18e   :  { %482 = vperm.xlu0 %2567, %v2908_v39  }
 0x18f   :  { %v441_v38 = vpop.permute.xlu1 %440 }
 0x190   :  { %v493_v48 = vrot.slane %v441_v38, %v2714_v3  ;;  %v447_v49 = vpop.permute.xlu0 %446 }
 0x191   :  { %v501_v59 = vrot.slane %v447_v49, %v2714_v3 }
 0x192   :  { %v551_v52 = vsel %vm550_vm1, %v493_v48, %v489_v45 }
 0x193   :  { %v444_v44 = vpop.permute.xlu1 %443 }
 0x194   :  { %v497_v51 = vrot.slane %v444_v44, %v2714_v3  ;;  %v453_v61 = vpop.permute.xlu0 %452 }
 0x195   :  { %v509_v8 = vrot.slane %v453_v61, %v2714_v3 }
 0x196   :  { %v553_v54 = vsel %vm552_vm2, %v497_v51, %v551_v52 }
 0x197   :  { %v450_v46 = vpop.permute.xlu1 %449  ;;  %v555_v62 = vsel %vm554_vm3, %v501_v59, %v553_v54 }
 0x198   :  { %v505_v58 = vrot.slane %v450_v46, %v2714_v3 }
 0x19a   :  { %v557_v2 = vsel %vm556_vm4, %v505_v58, %v555_v62 }
 0x19b   :  { %v559_v17 = vsel %vm558_vm5, %v509_v8, %v557_v2 }
 0x1ad   :  { %v456_v20 = vpop.permute.xlu1 %455 }
 0x1ae   :  { %v513_v7 = vrot.slane %v456_v20, %v2714_v3 }
 0x1b0   :  { %v561_v26 = vsel %vm560_vm6, %v513_v7, %v559_v17 }
 0x1c0   :  { %v459_v10 = vpop.permute.xlu0 %458 }
 0x1c1   :  { %v517_v16 = vrot.slane %v459_v10, %v2714_v3 }
 0x1c3   :  { %v563_v57 = vsel %vm562_vm7, %v517_v16, %v561_v26 }
 0x1c4   :  { %v574_v27 = vsel %vm573_vm8, %v563_v57, -inf }
 0x1c5   :  { %575 = vmax.xlane.f32.xlu1 %v574_v27 }
 0x1f2   :  { %v462_v15 = vpop.permute.xlu1 %461 }
 0x1f3   :  { %v521_v44 = vrot.slane %v462_v15, %v2714_v3 }
 0x1f9   :  { %v465_v11 = vpop.permute.xlu0 %464 }
 0x1fa   :  { %v525_v37 = vrot.slane %v465_v11, %v2714_v3 }
 0x1fc   :  { %v564_v51 = vsel %vm550_vm1, %v525_v37, %v521_v44 }
 0x1fd   :  { %v468_v25 = vpop.permute.xlu1 %467 }
 0x1fe   :  { %v529_v38 = vrot.slane %v468_v25, %v2714_v3 }
 0x200   :  { %v565_v45 = vsel %vm552_vm2, %v529_v38, %v564_v51 }
 0x201   :  { %v471_v18 = vpop.permute.xlu0 %470 }
 0x202   :  { %v533_v48 = vrot.slane %v471_v18, %v2714_v3 }
 0x204   :  { %v566_v54 = vsel %vm554_vm3, %v533_v48, %v565_v45 }
 0x205   :  { %v474_v41 = vpop.permute.xlu1 %473 }
 0x206   :  { %v537_v49 = vrot.slane %v474_v41, %v2714_v3 }
 0x208   :  { %v567_v59 = vsel %vm556_vm4, %v537_v49, %v566_v54 }
 0x209   :  { %v480_v46 = vpop.permute.xlu1 %479  ;;  %v477_v52 = vpop.permute.xlu0 %476 }
 0x20a   :  { %v541_v58 = vrot.slane %v477_v52, %v2714_v3  ;;  %v545_v20 = vrot.slane %v480_v46, %v2714_v3 }
 0x20c   :  { %v568_v61 = vsel %vm558_vm5, %v541_v58, %v567_v59 }
 0x20d   :  { %v483_v62 = vpop.permute.xlu0 %482  ;;  %v569_v7 = vsel %vm560_vm6, %v545_v20, %v568_v61 }
 0x20e   :  { %v549_v2 = vrot.slane %v483_v62, %v2714_v3 }
 0x210   :  { %v570_v8 = vsel %vm562_vm7, %v549_v2, %v569_v7 }
 0x211   :  { %v577_v10 = vsel %vm573_vm8, %v570_v8, -inf }
 0x212   :  { %578 = vmax.xlane.f32.xlu0 %v577_v10 }
 0x252   :  { %v576_v16 = vpop.xlane.xlu1 %575 }
 0x253   :  { %v585_v17 = vrot.slane %v576_v16, %v2754_v33  ;;  %v589_v26 = vrot.slane %v576_v16, %v2744_v29  ;;  %v593_v57 = vrot.slane %v576_v16, %v2751_v32  ;;  %v597_v27 = vrot.slane %v576_v16, %v2758_v35 }
 0x254   :  { %v605_v15 = vrot.slane %v576_v16, %v2772_v43  ;;  %v601_v37 = vrot.slane %v576_v16, %v2767_v40  ;;  %v613_v48 = vrot.slane %v576_v16, %v2793_v56  ;;  %v609_v45 = vrot.slane %v576_v16, %v2788_v53 }
 0x255   :  { %v662_v11 = vsub.f32 %v2859_v13, %v585_v17  ;;  %v663_v25 = vsub.f32 %v2863_v19, %v589_v26  ;;  %v665_v18 = vsub.f32 %v2865_v24, %v597_v27  ;;  %v664_v38 = vsub.f32 %v2871_v22, %v593_v57 }
 0x256   :  { %v667_v49 = vsub.f32 %v2873_v31, %v605_v15  ;;  %v666_v13 = vsub.f32 %v2877_v30, %v601_v37  ;;  %v669_v24 = vsub.f32 %v2884_v42, %v613_v48  ;;  %v668_v22 = vsub.f32 %v2880_v5, %v609_v45 }
 0x257   :  { %v678_v41 = vmul.f32 1.442695, %v662_v11  ;;  %v680_v44 = vmul.f32 1.442695, %v663_v25  ;;  %v684_v51 = vmul.f32 1.442695, %v665_v18 }
 0x258   :  { %v682_v19 = vmul.f32 1.442695, %v664_v38  ;;  %v688_v46 = vmul.f32 1.442695, %v667_v49  ;;  %v686_v52 = vmul.f32 1.442695, %v666_v13 }
 0x259   :  { %2569 = vpow2.f32 %v678_v41  ;;  %v692_v54 = vmul.f32 1.442695, %v669_v24  ;;  %v690_v31 = vmul.f32 1.442695, %v668_v22 }
 0x25a   :  { %2571 = vpow2.f32 %v680_v44 }
 0x25b   :  { %2573 = vpow2.f32 %v684_v51 }
 0x25c   :  { %2575 = vpow2.f32 %v682_v19 }
 0x25d   :  { %2577 = vpow2.f32 %v688_v46 }
 0x25e   :  { %2579 = vpow2.f32 %v686_v52 }
 0x25f   :  { %2581 = vpow2.f32 %v692_v54 }
 0x260   :  { %2583 = vpow2.f32 %v690_v31 }
 0x263   :  { %v2959_v58 = vpop.eup %2569 }
 0x264   :  { %v2961_v59 = vpop.eup %2571  ;;  %727 = vperm.xlu0 %2567, %v2959_v58  }
 0x265   :  { %730 = vperm.xlu1 %2568, %v2961_v59   ;;  %v2965_v30 = vpop.eup %2573 }
 0x266   :  { %v2967_v42 = vpop.eup %2575 }
 0x267   :  { %v2971_v5 = vpop.eup %2577 }
 0x268   :  { %736 = vperm.xlu0 %2567, %v2965_v30   ;;  %v2973_v20 = vpop.eup %2579 }
 0x269   :  { %733 = vperm.xlu1 %2568, %v2967_v42   ;;  %v2977_v61 = vpop.eup %2581 }
 0x26a   :  { %v2979_v62 = vpop.eup %2583 }
 0x26c   :  { %742 = vperm.xlu0 %2567, %v2971_v5  }
 0x26d   :  { %739 = vperm.xlu1 %2568, %v2973_v20  }
 0x270   :  { %748 = vperm.xlu0 %2567, %v2977_v61  }
 0x271   :  { %745 = vperm.xlu1 %2568, %v2979_v62  }
 0x29f   :  { %v579_v2 = vpop.xlane.xlu0 %578 }
 0x2a0   :  { %v617_v7 = vrot.slane %v579_v2, %v2754_v33  ;;  %v621_v8 = vrot.slane %v579_v2, %v2744_v29  ;;  %v625_v10 = vrot.slane %v579_v2, %v2751_v32  ;;  %v629_v16 = vrot.slane %v579_v2, %v2758_v35 }
 0x2a1   :  { %v633_v17 = vrot.slane %v579_v2, %v2767_v40  ;;  %v637_v15 = vrot.slane %v579_v2, %v2772_v43  ;;  %v641_v37 = vrot.slane %v579_v2, %v2788_v53  ;;  %v645_v44 = vrot.slane %v579_v2, %v2793_v56 }
 0x2a2   :  { %v670_v26 = vsub.f32 %v2887_v55, %v617_v7  ;;  %v671_v57 = vsub.f32 %v2890_v0, %v621_v8  ;;  %v672_v27 = vsub.f32 %v2893_v9, %v625_v10  ;;  %v673_v11 = vsub.f32 %v2896_v23, %v629_v16 }
 0x2a3   :  { %v674_v38 = vsub.f32 %v2899_v28, %v633_v17  ;;  %v675_v55 = vsub.f32 %v2904_v36, %v637_v15  ;;  %v676_v9 = vsub.f32 %v2902_v34, %v641_v37  ;;  %v677_v23 = vsub.f32 %v2908_v39, %v645_v44 }
 0x2a4   :  { %v694_v25 = vmul.f32 1.442695, %v670_v26  ;;  %v696_v18 = vmul.f32 1.442695, %v671_v57  ;;  %v698_v41 = vmul.f32 1.442695, %v672_v27 }
 0x2a5   :  { %v700_v0 = vmul.f32 1.442695, %v673_v11  ;;  %v702_v48 = vmul.f32 1.442695, %v674_v38  ;;  %v704_v49 = vmul.f32 1.442695, %v675_v55 }
 0x2a6   :  { %2585 = vpow2.f32 %v694_v25  ;;  %v706_v51 = vmul.f32 1.442695, %v676_v9  ;;  %v708_v28 = vmul.f32 1.442695, %v677_v23 }
 0x2a7   :  { %2587 = vpow2.f32 %v696_v18 }
 0x2a8   :  { %2589 = vpow2.f32 %v698_v41 }
 0x2a9   :  { %2591 = vpow2.f32 %v700_v0 }
 0x2aa   :  { %2593 = vpow2.f32 %v702_v48 }
 0x2ab   :  { %2595 = vpow2.f32 %v704_v49 }
 0x2ac   :  { %2597 = vpow2.f32 %v706_v51 }
 0x2ad   :  { %2599 = vpow2.f32 %v708_v28 }
 0x2b0   :  { %v2999_v45 = vpop.eup %2585 }
 0x2b1   :  { %v3001_v13 = vpop.eup %2587  ;;  %751 = vperm.xlu1 %2568, %v2999_v45  }
 0x2b2   :  { %754 = vperm.xlu0 %2567, %v3001_v13   ;;  %v3005_v34 = vpop.eup %2589 }
 0x2b3   :  { %v3007_v36 = vpop.eup %2591 }
 0x2b4   :  { %v3011_v39 = vpop.eup %2593 }
 0x2b5   :  { %757 = vperm.xlu1 %2568, %v3005_v34   ;;  %v3013_v19 = vpop.eup %2595 }
 0x2b6   :  { %760 = vperm.xlu0 %2567, %v3007_v36   ;;  %v3017_v24 = vpop.eup %2597 }
 0x2b7   :  { %v3019_v46 = vpop.eup %2599 }
 0x2b9   :  { %763 = vperm.xlu1 %2568, %v3011_v39  }
 0x2ba   :  { %766 = vperm.xlu0 %2567, %v3013_v19  }
 0x2bd   :  { %769 = vperm.xlu1 %2568, %v3017_v24  }
 0x2be   :  { %772 = vperm.xlu0 %2567, %v3019_v46  }
 0x2e3   :  { %v728_v22 = vpop.permute.xlu0 %727 }
 0x2e4   :  { %v731_v52 = vpop.permute.xlu1 %730  ;;  %v777_v31 = vrot.slane %v728_v22, %v2714_v3 }
 0x2e5   :  { %v781_v54 = vrot.slane %v731_v52, %v2714_v3 }
 0x2e7   :  { %v737_v2 = vpop.permute.xlu0 %736  ;;  %v838_v10 = vsel %vm550_vm1, %v781_v54, %v777_v31 }
 0x2e8   :  { %v734_v7 = vpop.permute.xlu1 %733  ;;  %v789_v16 = vrot.slane %v737_v2, %v2714_v3 }
 0x2e9   :  { %v785_v8 = vrot.slane %v734_v7, %v2714_v3 }
 0x2eb   :  { %v839_v17 = vsel %vm552_vm2, %v785_v8, %v838_v10  ;;  %v743_v26 = vpop.permute.xlu0 %742 }
 0x2ec   :  { %v740_v57 = vpop.permute.xlu1 %739  ;;  %v840_v15 = vsel %vm554_vm3, %v789_v16, %v839_v17  ;;  %v797_v11 = vrot.slane %v743_v26, %v2714_v3 }
 0x2ed   :  { %v793_v27 = vrot.slane %v740_v57, %v2714_v3 }
 0x2ef   :  { %v841_v25 = vsel %vm556_vm4, %v793_v27, %v840_v15  ;;  %v749_v18 = vpop.permute.xlu0 %748 }
 0x2f0   :  { %v746_v37 = vpop.permute.xlu1 %745  ;;  %v805_v38 = vrot.slane %v749_v18, %v2714_v3  ;;  %v842_v44 = vsel %vm558_vm5, %v797_v11, %v841_v25 }
 0x2f1   :  { %v801_v41 = vrot.slane %v746_v37, %v2714_v3 }
 0x2f3   :  { %v843_v55 = vsel %vm560_vm6, %v801_v41, %v842_v44 }
 0x2f4   :  { %v844_v0 = vsel %vm562_vm7, %v805_v38, %v843_v55 }
 0x2f5   :  { %v854_v9 = vsel %vm573_vm8, %v844_v0, 0.0 }
 0x2f6   :  { %855 = vadd.xlane.f32.xlu1 %v854_v9 }
 0x330   :  { %v752_v48 = vpop.permute.xlu1 %751 }
 0x331   :  { %v755_v23 = vpop.permute.xlu0 %754  ;;  %v809_v49 = vrot.slane %v752_v48, %v2714_v3 }
 0x332   :  { %v813_v51 = vrot.slane %v755_v23, %v2714_v3 }
 0x334   :  { %v758_v28 = vpop.permute.xlu1 %757  ;;  %v845_v54 = vsel %vm550_vm1, %v813_v51, %v809_v49 }
 0x335   :  { %v817_v22 = vrot.slane %v758_v28, %v2714_v3  ;;  %v761_v52 = vpop.permute.xlu0 %760 }
 0x336   :  { %v821_v31 = vrot.slane %v761_v52, %v2714_v3 }
 0x337   :  { %v846_v2 = vsel %vm552_vm2, %v817_v22, %v845_v54  ;;  %v2663_v54 = vmov 0.0  }
 0x338   :  { %v764_v7 = vpop.permute.xlu1 %763  ;;  %v847_v16 = vsel %vm554_vm3, %v821_v31, %v846_v2  ;;  %2461 = vmatprep.subr.mxu1 %v2663_v54  ;;  %2463 = vmatprep.mubr.msk.f32.mxu1 %vm2664_vm9, %v2663_v54 }
 0x339   :  { %v825_v8 = vrot.slane %v764_v7, %v2714_v3  ;;  %v767_v10 = vpop.permute.xlu0 %766  ;;  %2462 = vmatpush3.msra.mxu1 %v2723_v6  ;;  %2471 = vmatprep.subr.mxu0 %v2663_v54 }
 0x33a   :  { %v829_v17 = vrot.slane %v767_v10, %v2714_v3  ;;  %2466 = vmatprep.subr.mxu1 %v2663_v54  ;;  %2472 = vmatpush3.msra.mxu0 %v2716_v4 }
 0x33b   :  { %v848_v26 = vsel %vm556_vm4, %v825_v8, %v847_v16  ;;  %2473 = vmatprep.mubr.msk.f32.mxu0 %vm2664_vm9, %v2663_v54  ;;  %2481 = vmatprep.subr.mxu0 %v2663_v54 }
 0x33c   :  { %v770_v57 = vpop.permute.xlu1 %769  ;;  %v849_v11 = vsel %vm558_vm5, %v829_v17, %v848_v26 }
 0x33d   :  { %v833_v27 = vrot.slane %v770_v57, %v2714_v3  ;;  %v773_v15 = vpop.permute.xlu0 %772 }
 0x33e   :  { %v837_v25 = vrot.slane %v773_v15, %v2714_v3 }
 0x33f   :  { %v850_v18 = vsel %vm560_vm6, %v833_v27, %v849_v11 }
 0x340   :  { %v851_v37 = vsel %vm562_vm7, %v837_v25, %v850_v18  ;;  %v2605_v18 = vld [vmem:[#allocation2 + $0x8] sm:$0xff] }
 0x341   :  { %v857_v38 = vsel %vm573_vm8, %v851_v37, 0.0  ;;  %v2606_v37 = vld [vmem:[#allocation2 + $0x18] sm:$0xff] }
 0x342   :  { %858 = vadd.xlane.f32.xlu0 %v857_v38 }
 0x383   :  { %v856_v41 = vpop.xlane.xlu1 %855 }
 0x384   :  { %2601 = vrcp.f32 %v856_v41 }
 0x38e   :  { %v2602_v44 = vpop.eup %2601 }
 0x38f   :  { %v862_v55 = vmul.f32 %v2602_v44, %v856_v41 }
 0x391   :  { %v864_v0 = vsub.f32 2.0, %v862_v55 }
 0x393   :  { %v866_v9 = vmul.f32 %v2602_v44, %v864_v0  ;;  %v2607_v44 = vld [vmem:[#allocation2 + $0x20] sm:$0xff]  ;;  %v2608_v0 = vld [vmem:[#allocation2 + $0x28] sm:$0xff] }
 0x395   :  { %v877_v48 = vrot.slane %v866_v9, %v2744_v29  ;;  %v873_v23 = vrot.slane %v866_v9, %v2754_v33  ;;  %v881_v28 = vrot.slane %v866_v9, %v2751_v32  ;;  %v885_v22 = vrot.slane %v866_v9, %v2758_v35 }
 0x396   :  { %v889_v52 = vrot.slane %v866_v9, %v2767_v40  ;;  %v897_v2 = vrot.slane %v866_v9, %v2788_v53  ;;  %v901_v6 = vrot.slane %v866_v9, %v2793_v56 }
 0x397   :  { %v951_v49 = vmul.f32 %v2961_v59, %v877_v48  ;;  %v950_v51 = vmul.f32 %v2959_v58, %v873_v23  ;;  %v952_v31 = vmul.f32 %v2967_v42, %v881_v28  ;;  %v953_v59 = vmul.f32 %v2965_v30, %v885_v22  ;;  %v2609_v23 = vld [vmem:[#allocation2 + $0x30] sm:$0xff] }
 0x398   :  { %v893_v58 = vrot.slane %v866_v9, %v2772_v43  ;;  %v954_v42 = vmul.f32 %v2973_v20, %v889_v52  ;;  %v956_v7 = vmul.f32 %v2979_v62, %v897_v2  ;;  %v957_v4 = vmul.f32 %v2977_v61, %v901_v6 }
 0x399   :  { %1048 = vperm.xlu1 %2568, %v951_v49   ;;  %968 = vperm.xlu0 %2567, %v950_v51   ;;  %v2610_v51 = vld [vmem:[#allocation2 + $0x38] sm:$0xff] }
 0x39a   :  { %v955_v30 = vmul.f32 %v2971_v5, %v893_v58 }
 0x39d   :  { %1128 = vperm.xlu1 %2568, %v952_v31   ;;  %1208 = vperm.xlu0 %2567, %v953_v59  }
 0x3a1   :  { %1288 = vperm.xlu1 %2568, %v954_v42   ;;  %1368 = vperm.xlu0 %2567, %v955_v30  }
 0x3a5   :  { %1448 = vperm.xlu1 %2568, %v956_v7   ;;  %1528 = vperm.xlu0 %2567, %v957_v4  }
 0x3cf   :  { %v859_v8 = vpop.xlane.xlu0 %858 }
 0x3d0   :  { %2603 = vrcp.f32 %v859_v8 }
 0x3da   :  { %v2604_v10 = vpop.eup %2603 }
 0x3db   :  { %v863_v16 = vmul.f32 %v2604_v10, %v859_v8 }
 0x3dd   :  { %v865_v17 = vsub.f32 2.0, %v863_v16 }
 0x3df   :  { %v867_v20 = vmul.f32 %v2604_v10, %v865_v17 }
 0x3e1   :  { %v909_v5 = vrot.slane %v867_v20, %v2744_v29  ;;  %v905_v26 = vrot.slane %v867_v20, %v2754_v33  ;;  %v917_v62 = vrot.slane %v867_v20, %v2758_v35  ;;  %v913_v61 = vrot.slane %v867_v20, %v2751_v32 }
 0x3e2   :  { %v925_v25 = vrot.slane %v867_v20, %v2772_v43  ;;  %v921_v29 = vrot.slane %v867_v20, %v2767_v40  ;;  %v933_v35 = vrot.slane %v867_v20, %v2793_v56  ;;  %v929_v32 = vrot.slane %v867_v20, %v2788_v53 }
 0x3e3   :  { %v959_v57 = vmul.f32 %v3001_v13, %v909_v5  ;;  %v958_v27 = vmul.f32 %v2999_v45, %v905_v26  ;;  %v961_v15 = vmul.f32 %v3007_v36, %v917_v62  ;;  %v960_v11 = vmul.f32 %v3005_v34, %v913_v61 }
 0x3e4   :  { %v963_v33 = vmul.f32 %v3013_v19, %v925_v25  ;;  %v962_v45 = vmul.f32 %v3011_v39, %v921_v29  ;;  %v965_v13 = vmul.f32 %v3019_v46, %v933_v35  ;;  %v964_v34 = vmul.f32 %v3017_v24, %v929_v32 }
 0x3e5   :  { %1688 = vperm.xlu0 %2567, %v959_v57   ;;  %1608 = vperm.xlu1 %2568, %v958_v27  }
 0x3e9   :  { %1848 = vperm.xlu0 %2567, %v961_v15   ;;  %1768 = vperm.xlu1 %2568, %v960_v11  }
 0x3ed   :  { %2008 = vperm.xlu0 %2567, %v963_v33   ;;  %1928 = vperm.xlu1 %2568, %v962_v45  }
 0x3f1   :  { %2168 = vperm.xlu0 %2567, %v965_v13   ;;  %2088 = vperm.xlu1 %2568, %v964_v34  }
 0x418   :  { %v1049_v43 = vpop.permute.xlu1 %1048  ;;  %v969_v40 = vpop.permute.xlu0 %968 }
 0x419   :  { %v973_v36 = vrot.slane %v969_v40, %v2714_v3  ;;  %v1053_v53 = vrot.slane %v1049_v43, %v2714_v3 }
 0x41b   :  { %2464 = vmatmul.mubr.msk.f32.vlgmr.msra.gmra.mrb[0].mxu1 %vm573_vm8, %v973_v36 }
 0x41c   :  { %v1129_v19 = vpop.permute.xlu1 %1128  ;;  %v1209_v39 = vpop.permute.xlu0 %1208  ;;  %2467 = vmatpush3.msra.mxu1 %v2605_v18  ;;  %2468 = vmatprep.mubr.msk.f32.mxu1 %vm2664_vm9, %v2663_v54 }
 0x41d   :  { %v1133_v56 = vrot.slane %v1129_v19, %v2714_v3  ;;  %2476 = vmatprep.subr.mxu1 %v2663_v54  ;;  %v1213_v38 = vrot.slane %v1209_v39, %v2714_v3 }
 0x41f   :  { %2469 = vmatmul.mubr.msk.f32.vlgmr.msra.gmra.mrb[2].mxu1 %vm573_vm8, %v1053_v53  ;;  %2474 = vmatmul.mubr.msk.f32.vlgmr.msra.gmra.mrb[0].mxu0 %vm573_vm8, %v1133_v56 }
 0x420   :  { %v1289_v24 = vpop.permute.xlu1 %1288  ;;  %v1369_v46 = vpop.permute.xlu0 %1368  ;;  %2477 = vmatpush3.msra.mxu1 %v2606_v37  ;;  %2478 = vmatprep.mubr.msk.f32.mxu1 %vm2664_vm9, %v2663_v54 }
 0x421   :  { %v1293_v41 = vrot.slane %v1289_v24, %v2714_v3  ;;  %2482 = vmatpush3.msra.mxu0 %v2607_v44  ;;  %2483 = vmatprep.mubr.msk.f32.mxu0 %vm2664_vm9, %v2663_v54  ;;  %v1373_v9 = vrot.slane %v1369_v46, %v2714_v3 }
 0x422   :  { %2486 = vmatprep.subr.mxu1 %v2663_v54  ;;  %2491 = vmatprep.subr.mxu0 %v2663_v54 }
 0x423   :  { %2479 = vmatmul.mubr.msk.f32.vlgmr.msra.gmra.mrb[4].mxu1 %vm573_vm8, %v1213_v38  ;;  %2484 = vmatmul.mubr.msk.f32.vlgmr.msra.gmra.mrb[2].mxu0 %vm573_vm8, %v1293_v41 }
 0x424   :  { %v1449_v55 = vpop.permute.xlu1 %1448  ;;  %2487 = vmatpush3.msra.mxu1 %v2608_v0  ;;  %2488 = vmatprep.mubr.msk.f32.mxu1 %vm2664_vm9, %v2663_v54  ;;  %v1529_v49 = vpop.permute.xlu0 %1528 }
 0x425   :  { %v1453_v48 = vrot.slane %v1449_v55, %v2714_v3  ;;  %2492 = vmatpush3.msra.mxu0 %v2609_v23  ;;  %2493 = vmatprep.mubr.msk.f32.mxu0 %vm2664_vm9, %v2663_v54  ;;  %v1533_v28 = vrot.slane %v1529_v49, %v2714_v3 }
 0x426   :  { %2496 = vmatprep.subr.mxu1 %v2663_v54  ;;  %2501 = vmatprep.subr.mxu0 %v2663_v54 }
 0x427   :  { %2489 = vmatmul.mubr.msk.f32.vlgmr.msra.gmra.mrb[6].mxu1 %vm573_vm8, %v1373_v9  ;;  %2494 = vmatmul.mubr.msk.f32.vlgmr.msra.gmra.mrb[4].mxu0 %vm573_vm8, %v1453_v48 }
 0x428   :  { %2497 = vmatpush3.msra.mxu1 %v2610_v51  ;;  %2498 = vmatprep.mubr.msk.f32.mxu1 %vm2664_vm9, %v2663_v54 }
 0x429   :  { %2502 = vmatpush3.msra.mxu0 %v2777_v47  ;;  %2506 = vmatprep.subr.mxu1 %v2663_v54 }
 0x42a   :  { %2503 = vmatprep.mubr.msk.f32.mxu0 %vm2664_vm9, %v2663_v54  ;;  %2511 = vmatprep.subr.mxu0 %v2663_v54 }
 0x42b   :  { %2499 = vmatmul.mubr.msk.f32.vlgmr.msra.gmra.mrb[8].mxu1 %vm573_vm8, %v1533_v28 }
 0x42c   :  { %2507 = vmatpush3.msra.mxu1 %v2782_v50  ;;  %2508 = vmatprep.mubr.msk.f32.mxu1 %vm2664_vm9, %v2663_v54 }
 0x42d   :  { %2516 = vmatprep.subr.mxu1 %v2663_v54 }
 0x464   :  { %v1609_v22 = vpop.permute.xlu1 %1608  ;;  %v1689_v52 = vpop.permute.xlu0 %1688 }
 0x465   :  { %v1613_v47 = vrot.slane %v1609_v22, %v2714_v3  ;;  %v1693_v31 = vrot.slane %v1689_v52, %v2714_v3 }
 0x467   :  { %2504 = vmatmul.mubr.msk.f32.vlgmr.msra.gmra.mrb[6].mxu0 %vm573_vm8, %v1613_v47  ;;  %2509 = vmatmul.mubr.msk.f32.vlgmr.msra.gmra.mrb[10].mxu1 %vm573_vm8, %v1693_v31 }
 0x468   :  { %2512 = vmatpush3.msra.mxu0 %v2797_v60  ;;  %v1769_v59 = vpop.permute.xlu1 %1768  ;;  %2517 = vmatpush3.msra.mxu1 %v2802_v63  ;;  %v1849_v50 = vpop.permute.xlu0 %1848 }
 0x469   :  { %v1773_v58 = vrot.slane %v1769_v59, %v2714_v3  ;;  %v1853_v42 = vrot.slane %v1849_v50, %v2714_v3  ;;  %2513 = vmatprep.mubr.msk.f32.mxu0 %vm2664_vm9, %v2663_v54  ;;  %2518 = vmatprep.mubr.msk.f32.mxu1 %vm2664_vm9, %v2663_v54 }
 0x46a   :  { %2521 = vmatprep.subr.mxu0 %v2663_v54  ;;  %2526 = vmatprep.subr.mxu1 %v2663_v54 }
 0x46b   :  { %2514 = vmatmul.mubr.msk.f32.vlgmr.msra.gmra.mrb[8].mxu0 %vm573_vm8, %v1773_v58  ;;  %2519 = vmatmul.mubr.msk.f32.vlgmr.msra.gmra.mrb[12].mxu1 %vm573_vm8, %v1853_v42 }
 0x46c   :  { %2522 = vmatpush3.msra.mxu0 %v2806_v1  ;;  %v1929_v60 = vpop.permute.xlu1 %1928  ;;  %2527 = vmatpush3.msra.mxu1 %v2816_v12  ;;  %v2009_v63 = vpop.permute.xlu0 %2008 }
 0x46d   :  { %v1933_v30 = vrot.slane %v1929_v60, %v2714_v3  ;;  %v2013_v2 = vrot.slane %v2009_v63, %v2714_v3  ;;  %2523 = vmatprep.mubr.msk.f32.mxu0 %vm2664_vm9, %v2663_v54  ;;  %2528 = vmatprep.mubr.msk.f32.mxu1 %vm2664_vm9, %v2663_v54 }
 0x46e   :  { %2531 = vmatprep.subr.mxu0 %v2663_v54  ;;  %2536 = vmatprep.subr.mxu1 %v2663_v54 }
 0x46f   :  { %2524 = vmatmul.mubr.msk.f32.vlgmr.msra.gmra.mrb[10].mxu0 %vm573_vm8, %v1933_v30  ;;  %2529 = vmatmul.mubr.msk.f32.vlgmr.msra.gmra.mrb[14].mxu1 %vm573_vm8, %v2013_v2 }
 0x470   :  { %2532 = vmatpush3.msra.mxu0 %v2832_v21  ;;  %v2089_v1 = vpop.permute.xlu1 %2088  ;;  %2537 = vmatpush3.msra.mxu1 %v2820_v14  ;;  %v2169_v12 = vpop.permute.xlu0 %2168  ;;  %v2246_v21 = vld [vmem:[%s3228_s3] sm:$0xff]  ;;  %v2247_v14 = vld [vmem:[%s3228_s3 + $0x8] sm:$0xff] }
 0x471   :  { %v2093_v6 = vrot.slane %v2089_v1, %v2714_v3  ;;  %v2173_v7 = vrot.slane %v2169_v12, %v2714_v3  ;;  %2533 = vmatprep.mubr.msk.f32.mxu0 %vm2664_vm9, %v2663_v54  ;;  %2538 = vmatprep.mubr.msk.f32.mxu1 %vm2664_vm9, %v2663_v54  ;;  %v2552_v4 = vpack.c.bf16 %v2247_v14, %v2246_v21  ;;  %v2248_v3 = vld [vmem:[%s3228_s3 + $0x10] sm:$0xff]  ;;  %v2249_v54 = vld [vmem:[%s3228_s3 + $0x18] sm:$0xff] }
 0x472   :  { %v2556_v8 = vpack.c.bf16 %v2249_v54, %v2248_v3 }
 0x473   :  { %2534 = vmatmul.mubr.msk.f32.vlgmr.msra.gmra.mrb[12].mxu0 %vm573_vm8, %v2093_v6  ;;  %2539 = vmatmul.mubr.msk.f32.vlgmr.msra.gmra.mrb[16].mxu1 %vm573_vm8, %v2173_v7 }
 0x474   :  { %2553 = vmatprep.subr.bf16.mxu0 %v2552_v4 }
 0x475   :  { %2555 = vmatpush3.bf16.msra.mxu0 %v2552_v4  ;;  %v2420_v4 = vld [vmem:[%s3229_s4] ss:$0 sm:$0xff] }
 0x476   :  { %2557 = vmatprep.subr.bf16.mxu0 %v2556_v8 }
 0x479   :  { %2559 = vmatpush3.bf16.msra.mxu0 %v2556_v8 }
 0x4ee   :  { %v1042_v10 = vpop.f32.mrb[0].mxu1 }
 0x4ef   :  { %v2465_v16 = vpop.f32.mrb[1].mxu1 }
 0x4f2   :  { %v1122_v17 = vpop.f32.mrb[2].mxu1  ;;  %v1202_v20 = vpop.f32.mrb[0].mxu0 }
 0x4f3   :  { %v2273_v5 = vrot.slane %v1122_v17, 7  ;;  %v2275_v26 = vrot.slane %v1202_v20, 6  ;;  %v2470_v57 = vpop.f32.mrb[3].mxu1  ;;  %v2475_v27 = vpop.f32.mrb[1].mxu0 }
 0x4f5   :  { %v2274_v62 = vsel %vm550_vm1, %v2273_v5, %v1042_v10 }
 0x4f6   :  { %v2276_v61 = vsel %vm552_vm2, %v2275_v26, %v2274_v62  ;;  %v1282_v15 = vpop.f32.mrb[4].mxu1  ;;  %v1362_v11 = vpop.f32.mrb[2].mxu0 }
 0x4f7   :  { %v2277_v25 = vrot.slane %v1282_v15, 5  ;;  %v2279_v29 = vrot.slane %v1362_v11, 4  ;;  %v2480_v33 = vpop.f32.mrb[5].mxu1  ;;  %v2485_v45 = vpop.f32.mrb[3].mxu0 }
 0x4f9   :  { %v2278_v35 = vsel %vm554_vm3, %v2277_v25, %v2276_v61 }
 0x4fa   :  { %v2280_v32 = vsel %vm556_vm4, %v2279_v29, %v2278_v35  ;;  %v1442_v13 = vpop.f32.mrb[6].mxu1  ;;  %v1522_v34 = vpop.f32.mrb[4].mxu0 }
 0x4fb   :  { %v2281_v43 = vrot.slane %v1442_v13, 3  ;;  %v2283_v40 = vrot.slane %v1522_v34, 2  ;;  %v2490_v36 = vpop.f32.mrb[7].mxu1  ;;  %v2495_v19 = vpop.f32.mrb[5].mxu0 }
 0x4fd   :  { %v2282_v39 = vsel %vm558_vm5, %v2281_v43, %v2280_v32 }
 0x4fe   :  { %v2284_v18 = vsel %vm560_vm6, %v2283_v40, %v2282_v39  ;;  %v1602_v53 = vpop.f32.mrb[8].mxu1 }
 0x4ff   :  { %v2285_v56 = vrot.slane %v1602_v53, 1  ;;  %v2500_v24 = vpop.f32.mrb[9].mxu1 }
 0x501   :  { %v2286_v46 = vsel %vm562_vm7, %v2285_v56, %v2284_v18 }
 0x502   :  { %2549 = vmatprep.mubr.msk.f32.mxu0 %vm74_vm0, %v2286_v46 }
 0x53a   :  { %v1682_v37 = vpop.f32.mrb[6].mxu0  ;;  %v1762_v38 = vpop.f32.mrb[10].mxu1 }
 0x53b   :  { %v2287_v41 = vrot.slane %v1762_v38, 7  ;;  %v2505_v44 = vpop.f32.mrb[7].mxu0  ;;  %v2510_v55 = vpop.f32.mrb[11].mxu1 }
 0x53d   :  { %v2288_v0 = vsel %vm550_vm1, %v2287_v41, %v1682_v37 }
 0x53e   :  { %v1842_v9 = vpop.f32.mrb[8].mxu0  ;;  %v1922_v48 = vpop.f32.mrb[12].mxu1 }
 0x53f   :  { %v2289_v23 = vrot.slane %v1842_v9, 6  ;;  %v2291_v49 = vrot.slane %v1922_v48, 5  ;;  %v2515_v51 = vpop.f32.mrb[9].mxu0  ;;  %v2520_v28 = vpop.f32.mrb[13].mxu1 }
 0x541   :  { %v2290_v22 = vsel %vm552_vm2, %v2289_v23, %v2288_v0 }
 0x542   :  { %v2292_v52 = vsel %vm554_vm3, %v2291_v49, %v2290_v22  ;;  %v2002_v47 = vpop.f32.mrb[10].mxu0  ;;  %v2082_v31 = vpop.f32.mrb[14].mxu1 }
 0x543   :  { %v2293_v59 = vrot.slane %v2002_v47, 4  ;;  %v2295_v50 = vrot.slane %v2082_v31, 3  ;;  %v2525_v58 = vpop.f32.mrb[11].mxu0  ;;  %v2530_v42 = vpop.f32.mrb[15].mxu1 }
 0x545   :  { %v2294_v60 = vsel %vm556_vm4, %v2293_v59, %v2292_v52 }
 0x546   :  { %v2296_v63 = vsel %vm558_vm5, %v2295_v50, %v2294_v60  ;;  %v2162_v30 = vpop.f32.mrb[12].mxu0  ;;  %v2242_v2 = vpop.f32.mrb[16].mxu1 }
 0x547   :  { %v2297_v1 = vrot.slane %v2162_v30, 2  ;;  %v2299_v12 = vrot.slane %v2242_v2, 1  ;;  %v2535_v6 = vpop.f32.mrb[13].mxu0  ;;  %v2540_v7 = vpop.f32.mrb[17].mxu1 }
 0x549   :  { %v2298_v21 = vsel %vm560_vm6, %v2297_v1, %v2296_v63 }
 0x54a   :  { %v2300_v14 = vsel %vm562_vm7, %v2299_v12, %v2298_v21 }
 0x54b   :  { %2550 = vmatmul.mubr.msk.f32.vlgmr.msra.gmra.mrb[14].mxu0 %vm74_vm0, %v2300_v14 }
 0x61e   :  { %v2551_v3 = vpop.f32.mrb[14].mxu0 }
 0x61f   :  { %v2377_v54 = vadd.f32 %v2551_v3, %v2420_v4  ;;  %v2371_v8 = vpop.f32.mrb[15].mxu0 }
 0x620   :  { %v2372_v10 = vadd.f32 %v2420_v4, %v2371_v8 }
 0x621   :  { %v2381_v16 = vmax.f32 %v2377_v54, 0.0 }
 0x622   :  { %v2380_v17 = vmax.f32 %v2372_v10, 0.0 }
 0x623   :  { %2383 = vst.msk [vmem:[#allocation5 + $0x8] sm:$0xff] %vm74_vm0, %v2381_v16 }
 0x624   :  { %2382 = vst.msk [vmem:[#allocation5] sm:$0xff] %vm74_vm0, %v2380_v17 }
 0x625   :  { %2644 = shalt.err (!%p2641_p12)
}
 0x626   :  { %s2645_s27 = scalar_lea.hbm %s3230_s5, 256 }
 0x627   :  { %p2646_p13 = scmp.ne.s32.totalorder %s3230_s5, %s2645_s27  ;;  %p2649_p0 = scmp.lt.u32.totalorder %s2645_s27, %s3230_s5 }
 0x629   :  { %p2651_p1 = pnand %p2649_p0, %p2646_p13 }
 0x62b   :  { %2654 = shalt.err (!%p2651_p1)
}
 0x62c   :  { %2395 = dma.vmem_to_hbm [thread:$0]  %s2390_s24, 256, %s3230_s5, [#allocation4], %s2660_s28, %s2660_s28, %s2661_s29  }
 0x62d   :  { %2657 = dma.done.wait [#allocation4], 256  }
 0x62e   :  { %2658 = vsyncadd [#allocation4], 4294967040 }
 0x62f   :  { %2399 = vsyncpa [#allocation3], 1 }
 0x630   :  { %2400 = vsyncpa [#allocation4], 1 }

</bundles_post_ra>
